<compile_context>
chip_gen: v7x
topology: tpu7x:2x2x1
jax: 0.10.0
libtpu: 0.0.40
codegen_flags: <defaults>
</compile_context>

<pallas_src>
import functools

import jax
import jax.numpy as jnp
from jax.experimental import pallas as pl
from jax.experimental.pallas import tpu as pltpu

LEAKY_SLOPE = 0.01
BN_EPS = 1e-5


def _edge_head_kernel(node_ref, feat_ref, w1n_ref, w1f_ref, w2_ref,
                      bn_ref, w3_ref, b3_ref, out_ref):
    """Factored edge-prediction head. All operands resident in VMEM."""
    bs, F = out_ref.shape
    H1 = w2_ref.shape[0]
    H2 = w2_ref.shape[1]
    n_pairs = bs * F

    # ---- Layer 1 (factored): A = node @ W1[:E], B = feat @ W1[E:] -------------
    # bf16 MXU inputs, f32 accumulation.
    a = jnp.dot(node_ref[...].astype(jnp.bfloat16),
                w1n_ref[...].astype(jnp.bfloat16),
                preferred_element_type=jnp.float32)            # [bs, H1]
    b = jnp.dot(feat_ref[...].astype(jnp.bfloat16),
                w1f_ref[...].astype(jnp.bfloat16),
                preferred_element_type=jnp.float32)            # [F, H1]

    # Analytic BN stats over the bs*F virtual pair rows z[n] = A[n//F] + B[n%F]:
    #   mean(z) = mean(A) + mean(B),  var(z) = var(A) + var(B)   (biased vars)
    mean_a = jnp.mean(a, axis=0, keepdims=True)                 # [1, H1]
    mean_b = jnp.mean(b, axis=0, keepdims=True)
    var_a = jnp.mean(a * a, axis=0, keepdims=True) - mean_a * mean_a
    var_b = jnp.mean(b * b, axis=0, keepdims=True) - mean_b * mean_b
    mean1 = mean_a + mean_b
    var1 = var_a + var_b

    # Fused BN1 affine (linear bias b1 is cancelled by the mean subtraction).
    g1 = bn_ref[0:1, :]                                         # [1, H1]
    be1 = bn_ref[1:2, :]
    scale1 = g1 * jax.lax.rsqrt(var1 + BN_EPS)
    shift1 = be1 - mean1 * scale1

    # Broadcast pair sum + fused BN + LeakyReLU, all VPU work, no [N,2E] matrix.
    h = a[:, None, :] + b[None, :, :]                           # [bs, F, H1]
    h = h * scale1.reshape(1, 1, H1) + shift1.reshape(1, 1, H1)
    h = jnp.where(h >= 0.0, h, LEAKY_SLOPE * h)

    # ---- Layer 2: batched MXU matmul (bf16 in, f32 acc) -----------------------
    w2b = jnp.broadcast_to(w2_ref[...].astype(jnp.bfloat16)[None, :, :],
                           (bs, H1, H2))
    h2 = jax.lax.dot_general(h.astype(jnp.bfloat16), w2b,
                             dimension_numbers=(((2,), (1,)), ((0,), (0,))),
                             preferred_element_type=jnp.float32)  # [bs, F, H2]

    # One-pass BN2 stats over all bs*F rows (bias b2 cancelled as well).
    s1 = jnp.sum(jnp.sum(h2, axis=1, keepdims=True), axis=0, keepdims=True)
    s2 = jnp.sum(jnp.sum(h2 * h2, axis=1, keepdims=True), axis=0, keepdims=True)
    inv_n = 1.0 / float(n_pairs)
    mean2 = s1 * inv_n                                          # [1, 1, H2]
    var2 = s2 * inv_n - mean2 * mean2

    g2 = bn_ref[2:3, :H2].reshape(1, 1, H2)
    be2 = bn_ref[3:4, :H2].reshape(1, 1, H2)
    scale2 = g2 * jax.lax.rsqrt(var2 + BN_EPS)
    shift2 = be2 - mean2 * scale2
    h2 = h2 * scale2 + shift2
    h2 = jnp.where(h2 >= 0.0, h2, LEAKY_SLOPE * h2)

    # ---- Layer 3: VPU multiply + lane reduction (no 1-column MXU matmul) ------
    w3 = w3_ref[...].reshape(1, 1, H2)
    out = jnp.sum(h2 * w3, axis=-1) + b3_ref[0]                 # [bs, F] lane-dense
    out_ref[...] = out.astype(out_ref.dtype)


def _full_spec(shape):
    # Whole-array block (small problem -> single grid step, everything in VMEM).
    return pl.BlockSpec(shape, lambda: tuple(0 for _ in shape))


@functools.partial(jax.jit, static_argnames=("num_features",))
def edge_prediction_head(node_emb, feature_emb, params, *, num_features):
    """node_emb: [bs, E] f32, feature_emb: [F, E] f32 -> [bs, F] f32 logits."""
    bs, E = node_emb.shape
    F = num_features
    (w1, b1, g1, be1, w2, b2, g2, be2, w3, b3) = params
    H1, H2 = w1.shape[1], w2.shape[1]
    del b1, b2  # mathematically dead: cancelled by BatchNorm mean subtraction

    # Split W1 into node / feature halves (input was [node || feature]).
    w1n = w1[:E, :]
    w1f = w1[E:, :]

    # Pack the tiny per-layer BN vectors into one [4, H1] array (fewer DMAs).
    pad = H1 - H2
    bn = jnp.stack([
        g1.reshape(H1),
        be1.reshape(H1),
        jnp.pad(g2.reshape(H2), (0, pad)),
        jnp.pad(be2.reshape(H2), (0, pad)),
    ], axis=0)

    w3_row = w3.reshape(1, H2)        # [H2,1] -> row vector for VPU reduction
    b3_s = b3.reshape(1)              # scalar bias -> SMEM

    out = pl.pallas_call(
        _edge_head_kernel,
        out_shape=jax.ShapeDtypeStruct((bs, F), jnp.float32),
        grid=(),
        in_specs=[
            _full_spec((bs, E)),          # node_emb
            _full_spec((F, E)),           # feature_emb
            _full_spec((E, H1)),          # w1 (node half)
            _full_spec((E, H1)),          # w1 (feature half)
            _full_spec((H1, H2)),         # w2
            _full_spec((4, H1)),          # packed BN gamma/beta
            _full_spec((1, H2)),          # w3 row
            pl.BlockSpec(memory_space=pltpu.MemorySpace.SMEM),   # b3 scalar
        ],
        out_specs=_full_spec((bs, F)),
    )(node_emb, feature_emb, w1n, w1f, w2, bn, w3_row, b3_s)

    return out


def init_params(key, node_emb_size):
    """Deterministic init matching PyTorch shapes (node_emb_size >= 8 branch).
    Linear weights stored pre-transposed as [in, out]; biases/BN params as [1, out]."""
    E = node_emb_size
    H1, H2 = E // 2, E // 4
    ks = jax.random.split(key, 6)

    def lin(kw, kb, fan_in, fan_out):
        bound = 1.0 / jnp.sqrt(fan_in)
        w = jax.random.uniform(kw, (fan_in, fan_out), jnp.float32, -bound, bound)
        b = jax.random.uniform(kb, (1, fan_out), jnp.float32, -bound, bound)
        return w, b

    w1, b1 = lin(ks[0], ks[1], 2 * E, H1)
    w2, b2 = lin(ks[2], ks[3], H1, H2)
    w3, b3 = lin(ks[4], ks[5], H2, 1)
    # BatchNorm1d default init: gamma = 1, beta = 0.
    g1, be1 = jnp.ones((1, H1), jnp.float32), jnp.zeros((1, H1), jnp.float32)
    g2, be2 = jnp.ones((1, H2), jnp.float32), jnp.zeros((1, H2), jnp.float32)
    return (w1, b1, g1, be1, w2, b2, g2, be2, w3, b3)


def _reference(node_emb, feature_emb, params, num_features):
    """Pure-JAX f32 reference following the PyTorch formulation literally."""
    bs = node_emb.shape[0]
    x = jnp.concatenate([jnp.repeat(node_emb, num_features, axis=0),
                         jnp.tile(feature_emb, (bs, 1))], axis=1)
    (w1, b1, g1, be1, w2, b2, g2, be2, w3, b3) = params

    def bn(h, g, b):
        m = h.mean(0, keepdims=True)
        v = ((h - m) ** 2).mean(0, keepdims=True)
        return (h - m) / jnp.sqrt(v + BN_EPS) * g + b

    def lrelu(h):
        return jnp.where(h >= 0, h, LEAKY_SLOPE * h)

    h = lrelu(bn(x @ w1 + b1, g1, be1))
    h = lrelu(bn(h @ w2 + b2, g2, be2))
    return (h @ w3 + b3).reshape(bs, num_features)


if __name__ == "__main__":
    node_emb_size = 32     # -> 3-layer decode branch (E//4 = 8 > 1)
    num_features = 8
    bs = 2

    key = jax.random.PRNGKey(0)
    k_node, k_feat, k_param = jax.random.split(key, 3)
    node_emb = jax.random.normal(k_node, (bs, node_emb_size), jnp.float32)
    feature_emb = jax.random.normal(k_feat, (num_features, node_emb_size), jnp.float32)
    params = init_params(k_param, node_emb_size)

    out = edge_prediction_head(node_emb, feature_emb, params,
                               num_features=num_features)
    out = jax.block_until_ready(out)

    ref = _reference(node_emb, feature_emb, params, num_features)
    assert out.shape == (bs, num_features)
    # Tolerance accounts for bf16 MXU inputs in the kernel vs. the f32 reference.
    assert jnp.allclose(out, ref, atol=5e-2, rtol=5e-2)

    print("KERNEL_OK")
</pallas_src>

<mosaic_0001>
module attributes {stable_mosaic.version = 11 : i64} {
  func.func @_edge_head_kernel(%arg0: memref<2x32xf32, #tpu.memory_space<vmem>>, %arg1: memref<8x32xf32, #tpu.memory_space<vmem>>, %arg2: memref<32x16xf32, #tpu.memory_space<vmem>>, %arg3: memref<32x16xf32, #tpu.memory_space<vmem>>, %arg4: memref<16x8xf32, #tpu.memory_space<vmem>>, %arg5: memref<4x16xf32, #tpu.memory_space<vmem>>, %arg6: memref<1x8xf32, #tpu.memory_space<vmem>>, %arg7: memref<1xf32, #tpu.memory_space<smem>>, %arg8: memref<2x8xf32, #tpu.memory_space<vmem>>) attributes {dimension_semantics = [], scalar_prefetch = 0 : i64, scratch_operands = 0 : i64, tpu.core_type = #tpu.core_type<tc>} {
    %c0 = arith.constant 0 : index
    %c0_0 = arith.constant 0 : index
    %0 = vector.load %arg0[%c0, %c0_0] : memref<2x32xf32, #tpu.memory_space<vmem>>, vector<2x32xf32>
    %1 = arith.truncf %0 : vector<2x32xf32> to vector<2x32xbf16>
    %c0_1 = arith.constant 0 : index
    %c0_2 = arith.constant 0 : index
    %2 = vector.load %arg2[%c0_1, %c0_2] : memref<32x16xf32, #tpu.memory_space<vmem>>, vector<32x16xf32>
    %3 = arith.truncf %2 : vector<32x16xf32> to vector<32x16xbf16>
    %cst = arith.constant dense<0.000000e+00> : vector<2x16xf32>
    %4 = tpu.matmul %1, %3, %cst {dimension_numbers = #tpu.dot_dimension_numbers<[1], [0], [0], [1], [0, 0, 1, 1], [], []>} : vector<2x32xbf16>, vector<32x16xbf16>, vector<2x16xf32> -> vector<2x16xf32>
    %c0_3 = arith.constant 0 : index
    %c0_4 = arith.constant 0 : index
    %5 = vector.load %arg1[%c0_3, %c0_4] : memref<8x32xf32, #tpu.memory_space<vmem>>, vector<8x32xf32>
    %6 = arith.truncf %5 : vector<8x32xf32> to vector<8x32xbf16>
    %c0_5 = arith.constant 0 : index
    %c0_6 = arith.constant 0 : index
    %7 = vector.load %arg3[%c0_5, %c0_6] : memref<32x16xf32, #tpu.memory_space<vmem>>, vector<32x16xf32>
    %8 = arith.truncf %7 : vector<32x16xf32> to vector<32x16xbf16>
    %cst_7 = arith.constant dense<0.000000e+00> : vector<8x16xf32>
    %9 = tpu.matmul %6, %8, %cst_7 {dimension_numbers = #tpu.dot_dimension_numbers<[1], [0], [0], [1], [0, 0, 1, 1], [], []>} : vector<8x32xbf16>, vector<32x16xbf16>, vector<8x16xf32> -> vector<8x16xf32>
    %cst_8 = arith.constant dense<0.000000e+00> : vector<16xf32>
    %10 = vector.multi_reduction <add>, %4, %cst_8 [0] : vector<2x16xf32> to vector<16xf32>
    %11 = vector.shape_cast %10 : vector<16xf32> to vector<1x16xf32>
    %cst_9 = arith.constant 2.000000e+00 : f32
    %12 = vector.broadcast %cst_9 : f32 to vector<1x16xf32>
    %13 = arith.divf %11, %12 : vector<1x16xf32>
    %cst_10 = arith.constant dense<0.000000e+00> : vector<16xf32>
    %14 = vector.multi_reduction <add>, %9, %cst_10 [0] : vector<8x16xf32> to vector<16xf32>
    %15 = vector.shape_cast %14 : vector<16xf32> to vector<1x16xf32>
    %cst_11 = arith.constant 8.000000e+00 : f32
    %16 = vector.broadcast %cst_11 : f32 to vector<1x16xf32>
    %17 = arith.divf %15, %16 : vector<1x16xf32>
    %18 = arith.mulf %4, %4 : vector<2x16xf32>
    %cst_12 = arith.constant dense<0.000000e+00> : vector<16xf32>
    %19 = vector.multi_reduction <add>, %18, %cst_12 [0] : vector<2x16xf32> to vector<16xf32>
    %20 = vector.shape_cast %19 : vector<16xf32> to vector<1x16xf32>
    %cst_13 = arith.constant 2.000000e+00 : f32
    %21 = vector.broadcast %cst_13 : f32 to vector<1x16xf32>
    %22 = arith.divf %20, %21 : vector<1x16xf32>
    %23 = arith.mulf %13, %13 : vector<1x16xf32>
    %24 = arith.subf %22, %23 : vector<1x16xf32>
    %25 = arith.mulf %9, %9 : vector<8x16xf32>
    %cst_14 = arith.constant dense<0.000000e+00> : vector<16xf32>
    %26 = vector.multi_reduction <add>, %25, %cst_14 [0] : vector<8x16xf32> to vector<16xf32>
    %27 = vector.shape_cast %26 : vector<16xf32> to vector<1x16xf32>
    %cst_15 = arith.constant 8.000000e+00 : f32
    %28 = vector.broadcast %cst_15 : f32 to vector<1x16xf32>
    %29 = arith.divf %27, %28 : vector<1x16xf32>
    %30 = arith.mulf %17, %17 : vector<1x16xf32>
    %31 = arith.subf %29, %30 : vector<1x16xf32>
    %32 = arith.addf %13, %17 : vector<1x16xf32>
    %33 = arith.addf %24, %31 : vector<1x16xf32>
    %c0_16 = arith.constant 0 : index
    %c0_17 = arith.constant 0 : index
    %34 = vector.load %arg5[%c0_16, %c0_17] : memref<4x16xf32, #tpu.memory_space<vmem>>, vector<1x16xf32>
    %c1 = arith.constant 1 : index
    %c0_18 = arith.constant 0 : index
    %35 = vector.load %arg5[%c1, %c0_18] : memref<4x16xf32, #tpu.memory_space<vmem>>, vector<1x16xf32>
    %cst_19 = arith.constant 9.99999974E-6 : f32
    %36 = vector.broadcast %cst_19 : f32 to vector<1x16xf32>
    %37 = arith.addf %33, %36 : vector<1x16xf32>
    %38 = math.rsqrt %37 : vector<1x16xf32>
    %39 = arith.mulf %34, %38 : vector<1x16xf32>
    %40 = arith.mulf %32, %39 : vector<1x16xf32>
    %41 = arith.subf %35, %40 : vector<1x16xf32>
    %42 = vector.shape_cast %4 : vector<2x16xf32> to vector<2x1x16xf32>
    %43 = vector.shape_cast %9 : vector<8x16xf32> to vector<1x8x16xf32>
    %44 = vector.broadcast %42 : vector<2x1x16xf32> to vector<2x8x16xf32>
    %45 = vector.broadcast %43 : vector<1x8x16xf32> to vector<2x8x16xf32>
    %46 = arith.addf %44, %45 : vector<2x8x16xf32>
    %47 = vector.shape_cast %39 : vector<1x16xf32> to vector<1x1x16xf32>
    %48 = vector.broadcast %47 : vector<1x1x16xf32> to vector<2x8x16xf32>
    %49 = arith.mulf %46, %48 : vector<2x8x16xf32>
    %50 = vector.shape_cast %41 : vector<1x16xf32> to vector<1x1x16xf32>
    %51 = vector.broadcast %50 : vector<1x1x16xf32> to vector<2x8x16xf32>
    %52 = arith.addf %49, %51 : vector<2x8x16xf32>
    %cst_20 = arith.constant 0.000000e+00 : f32
    %53 = vector.broadcast %cst_20 : f32 to vector<2x8x16xf32>
    %54 = arith.cmpf oge, %52, %53 : vector<2x8x16xf32>
    %cst_21 = arith.constant 0.00999999977 : f32
    %55 = vector.broadcast %cst_21 : f32 to vector<2x8x16xf32>
    %56 = arith.mulf %55, %52 : vector<2x8x16xf32>
    %57 = arith.select %54, %52, %56 : vector<2x8x16xi1>, vector<2x8x16xf32>
    %c0_22 = arith.constant 0 : index
    %c0_23 = arith.constant 0 : index
    %58 = vector.load %arg4[%c0_22, %c0_23] : memref<16x8xf32, #tpu.memory_space<vmem>>, vector<16x8xf32>
    %59 = arith.truncf %58 : vector<16x8xf32> to vector<16x8xbf16>
    %60 = vector.shape_cast %59 : vector<16x8xbf16> to vector<1x16x8xbf16>
    %61 = vector.shape_cast %60 : vector<1x16x8xbf16> to vector<1x16x8xbf16>
    %62 = vector.broadcast %61 : vector<1x16x8xbf16> to vector<2x16x8xbf16>
    %63 = arith.truncf %57 : vector<2x8x16xf32> to vector<2x8x16xbf16>
    %cst_24 = arith.constant dense<0.000000e+00> : vector<2x8x8xf32>
    %64 = tpu.matmul %63, %62, %cst_24 {dimension_numbers = #tpu.dot_dimension_numbers<[2], [1], [1], [2], [0, 0, 0, 1, 1, 2], [0], [0]>} : vector<2x8x16xbf16>, vector<2x16x8xbf16>, vector<2x8x8xf32> -> vector<2x8x8xf32>
    %cst_25 = arith.constant dense<0.000000e+00> : vector<2x8xf32>
    %65 = vector.multi_reduction <add>, %64, %cst_25 [1] : vector<2x8x8xf32> to vector<2x8xf32>
    %66 = vector.shape_cast %65 : vector<2x8xf32> to vector<2x1x8xf32>
    %cst_26 = arith.constant dense<0.000000e+00> : vector<1x8xf32>
    %67 = vector.multi_reduction <add>, %66, %cst_26 [0] : vector<2x1x8xf32> to vector<1x8xf32>
    %68 = vector.shape_cast %67 : vector<1x8xf32> to vector<1x1x8xf32>
    %69 = arith.mulf %64, %64 : vector<2x8x8xf32>
    %cst_27 = arith.constant dense<0.000000e+00> : vector<2x8xf32>
    %70 = vector.multi_reduction <add>, %69, %cst_27 [1] : vector<2x8x8xf32> to vector<2x8xf32>
    %71 = vector.shape_cast %70 : vector<2x8xf32> to vector<2x1x8xf32>
    %cst_28 = arith.constant dense<0.000000e+00> : vector<1x8xf32>
    %72 = vector.multi_reduction <add>, %71, %cst_28 [0] : vector<2x1x8xf32> to vector<1x8xf32>
    %73 = vector.shape_cast %72 : vector<1x8xf32> to vector<1x1x8xf32>
    %cst_29 = arith.constant 6.250000e-02 : f32
    %74 = vector.broadcast %cst_29 : f32 to vector<1x1x8xf32>
    %75 = arith.mulf %68, %74 : vector<1x1x8xf32>
    %cst_30 = arith.constant 6.250000e-02 : f32
    %76 = vector.broadcast %cst_30 : f32 to vector<1x1x8xf32>
    %77 = arith.mulf %73, %76 : vector<1x1x8xf32>
    %78 = arith.mulf %75, %75 : vector<1x1x8xf32>
    %79 = arith.subf %77, %78 : vector<1x1x8xf32>
    %c2 = arith.constant 2 : index
    %c0_31 = arith.constant 0 : index
    %80 = vector.load %arg5[%c2, %c0_31] : memref<4x16xf32, #tpu.memory_space<vmem>>, vector<1x8xf32>
    %81 = vector.shape_cast %80 : vector<1x8xf32> to vector<1x1x8xf32>
    %c3 = arith.constant 3 : index
    %c0_32 = arith.constant 0 : index
    %82 = vector.load %arg5[%c3, %c0_32] : memref<4x16xf32, #tpu.memory_space<vmem>>, vector<1x8xf32>
    %83 = vector.shape_cast %82 : vector<1x8xf32> to vector<1x1x8xf32>
    %cst_33 = arith.constant 9.99999974E-6 : f32
    %84 = vector.broadcast %cst_33 : f32 to vector<1x1x8xf32>
    %85 = arith.addf %79, %84 : vector<1x1x8xf32>
    %86 = math.rsqrt %85 : vector<1x1x8xf32>
    %87 = arith.mulf %81, %86 : vector<1x1x8xf32>
    %88 = arith.mulf %75, %87 : vector<1x1x8xf32>
    %89 = arith.subf %83, %88 : vector<1x1x8xf32>
    %90 = vector.broadcast %87 : vector<1x1x8xf32> to vector<2x8x8xf32>
    %91 = arith.mulf %64, %90 : vector<2x8x8xf32>
    %92 = vector.broadcast %89 : vector<1x1x8xf32> to vector<2x8x8xf32>
    %93 = arith.addf %91, %92 : vector<2x8x8xf32>
    %cst_34 = arith.constant 0.000000e+00 : f32
    %94 = vector.broadcast %cst_34 : f32 to vector<2x8x8xf32>
    %95 = arith.cmpf oge, %93, %94 : vector<2x8x8xf32>
    %cst_35 = arith.constant 0.00999999977 : f32
    %96 = vector.broadcast %cst_35 : f32 to vector<2x8x8xf32>
    %97 = arith.mulf %96, %93 : vector<2x8x8xf32>
    %98 = arith.select %95, %93, %97 : vector<2x8x8xi1>, vector<2x8x8xf32>
    %c0_36 = arith.constant 0 : index
    %c0_37 = arith.constant 0 : index
    %99 = vector.load %arg6[%c0_36, %c0_37] : memref<1x8xf32, #tpu.memory_space<vmem>>, vector<1x8xf32>
    %100 = vector.shape_cast %99 : vector<1x8xf32> to vector<1x1x8xf32>
    %101 = vector.broadcast %100 : vector<1x1x8xf32> to vector<2x8x8xf32>
    %102 = arith.mulf %98, %101 : vector<2x8x8xf32>
    %cst_38 = arith.constant dense<0.000000e+00> : vector<2x8xf32>
    %103 = vector.multi_reduction <add>, %102, %cst_38 [2] : vector<2x8x8xf32> to vector<2x8xf32>
    %c0_39 = arith.constant 0 : index
    %104 = memref.load %arg7[%c0_39] : memref<1xf32, #tpu.memory_space<smem>>
    %105 = vector.broadcast %104 : f32 to vector<2x8xf32>
    %106 = arith.addf %103, %105 : vector<2x8xf32>
    %c0_40 = arith.constant 0 : index
    %c0_41 = arith.constant 0 : index
    %107 = vector.load %arg8[%c0_40, %c0_41] : memref<2x8xf32, #tpu.memory_space<vmem>>, vector<2x8xf32>
    tpu.vector_store %arg8[%c0_40, %c0_41], %106 {strides = array<i32>} : memref<2x8xf32, #tpu.memory_space<vmem>>, vector<2x8xf32>,
    return
  }
}

</mosaic_0001>

<bundles_post_ra>
// kernel: edge_prediction_head.1
= control target key start
LH: loop header
LB: loop body
LE: loop exit
PB: predicated region body
PF: predicated region fallthrough
CT: control target
= control target key end

     0   :  { %v521_v3 = vmov 0.0   ;;  %vm522_vm0 = vmmov 0   ;;  %s669_s0 = inlined_call_operand.vmem [shape: f32[2,32], index: 0, kind: input, shape index: {}]   ;;  %s670_s1 = inlined_call_operand.vmem [shape: f32[8,32], index: 1, kind: input, shape index: {}]   ;;  %s671_s2 = inlined_call_operand.vmem [shape: f32[32,16], index: 2, kind: input, shape index: {}]   ;;  %s672_s3 = inlined_call_operand.vmem [shape: f32[32,16], index: 3, kind: input, shape index: {}]   ;;  %s673_s4 = inlined_call_operand.vmem [shape: f32[16,8], index: 4, kind: input, shape index: {}]   ;;  %s674_s5 = inlined_call_operand.vmem [shape: f32[4,16], index: 5, kind: input, shape index: {}]   ;;  %s675_s6 = inlined_call_operand.vmem [shape: f32[1,8], index: 6, kind: input, shape index: {}]   ;;  %s676_s7 = inlined_call_operand.<no memory space> [shape: f32[1], index: 7, kind: input, shape index: {}]   ;;  %s677_s8 = inlined_call_operand.hbm [shape: f32[2,8], index: 8, kind: output, shape index: {}]  }
   0x1   :  { %v34_v0 = vld [vmem:[%s671_s2] sm:$0xff]  ;;  %v35_v1 = vld [vmem:[%s671_s2 + $0x8] sm:$0xff]  ;;  %461 = vmatprep.subr.bf16.mxu0 %v521_v3  ;;  %469 = vmatprep.subr.bf16.mxu1 %v521_v3  ;;  %v36_v6 = vld [vmem:[%s671_s2 + $0x10] sm:$0xff] }
   0x2   :  { %v86_v2 = vld [vmem:[%s672_s3] sm:$0xff]  ;;  %v38_v4 = vpack.c.bf16 %v35_v1, %v34_v0  ;;  %v87_v5 = vld [vmem:[%s672_s3 + $0x8] sm:$0xff]  ;;  %v37_v7 = vld [vmem:[%s671_s2 + $0x18] sm:$0xff]  ;;  %465 = vmatprep.mubr.msk.bf16.mxu0 %vm522_vm0, %v521_v3  ;;  %473 = vmatprep.mubr.msk.bf16.mxu1 %vm522_vm0, %v521_v3 }
   0x3   :  { %v90_v8 = vpack.c.bf16 %v87_v5, %v86_v2  ;;  %v88_v9 = vld [vmem:[%s672_s3 + $0x10] sm:$0xff]  ;;  %v89_v10 = vld [vmem:[%s672_s3 + $0x18] sm:$0xff]  ;;  %v39_v11 = vpack.c.bf16 %v37_v7, %v36_v6  ;;  %v32_v12 = vld [vmem:[%s669_s0] sm:$0x3] }
   0x4   :  { %462 = vmatpush3.bf16.msra.mxu0 %v38_v4 }
   0x5   :  { %14 = vsyncpa [#allocation4], 0  ;;  %470 = vmatpush3.bf16.msra.mxu1 %v90_v8  ;;  %463 = vmatprep.subr.bf16.mxu0 %v521_v3  ;;  %v91_v13 = vpack.c.bf16 %v89_v10, %v88_v9  ;;  %v84_v14 = vld [vmem:[%s670_s1] sm:$0xff]  ;;  %v33_v15 = vpack.c.bf16 %v32_v12, %v32_v12  ;;  %vm40_vm1 = vcmask 261120   ;;  %v240_v18 = vld [vmem:[%s673_s4 + $0x8] sm:$0xff]  ;;  %v190_v22 = vlaneseq }
   0x6   :  { %471 = vmatprep.subr.bf16.mxu1 %v521_v3  ;;  %v85_v16 = vpack.c.bf16 %v84_v14, %v84_v14  ;;  %v239_v17 = vld [vmem:[%s673_s4] sm:$0xff]  ;;  %v523_v20 = vmov 1966171168   ;;  %vm135_vm2 = vcmask 123904   ;;  %vm145_vm3 = vcmask 130048  }
   0x7   :  { %v241_v19 = vpack.c.bf16 %v240_v18, %v239_v17  ;;  %v188_v21 = vunpack.c.l.s4 %v523_v20  ;;  %v611_v24 = vshrl.u32 %v190_v22, 7  ;;  %v179_v20 = vld [vmem:[%s674_s5] sm:$0x1]  ;;  %vm330_vm6 = vcmask 64512  }
   0x8   :  { %464 = vmatpush3.bf16.msra.mxu0 %v39_v11  ;;  %vm427_vm9 = vcmask 1041409   ;;  %vm430_vm10 = vcmask 58368  }
   0x9   :  { %472 = vmatpush3.bf16.msra.mxu1 %v91_v13  ;;  %477 = vmatprep.subr.bf16.mxu0 %v521_v3  ;;  %v189_v23 = vunpack.c.0.s8 %v188_v21  ;;  %v615_v30 = vsub.s32 0, %v611_v24 }
   0xa   :  { %483 = vmatprep.subr.bf16.mxu1 %v521_v3 }
   0xb   :  { %466 = vmatmul.mubr.msk.bf16.vlgmr.msra.gmra.mrb[0].mxu0 %vm40_vm1, %v33_v15  ;;  %v192_v25 = vsub.s32 %v189_v23, %v611_v24 }
   0xc   :  { %474 = vmatmul.mubr.msk.bf16.vlgmr.msra.gmra.mrb[0].mxu1 %vm40_vm1, %v85_v16  ;;  %479 = vmatprep.mubr.msk.bf16.mxu0 %vm522_vm0, %v521_v3 }
   0xd   :  { %485 = vmatprep.mubr.msk.bf16.mxu1 %vm522_vm0, %v521_v3  ;;  %478 = vmatpush3.bf16.msra.mxu0 %v241_v19 }
   0xe   :  { %484 = vmatpush3.bf16.msra.mxu1 %v241_v19 }
  0xde   :  { %v78_v26 = vpop.f32.mrb[0].mxu0 }
  0xdf   :  { %v136_v27 = vsel %vm135_vm2, %v78_v26, 0.0  ;;  %v155_v28 = vmul.f32 %v78_v26, %v78_v26  ;;  %v193_v29 = vrot.slane %v78_v26, %v192_v25  ;;  %v129_v31 = vpop.f32.mrb[0].mxu1  ;;  %v467_v32 = vpop.f32.mrb[1].mxu0 }
  0xe0   :  { %v137_v33 = vrot.slane %v136_v27, 4  ;;  %v146_v34 = vsel %vm145_vm3, %v129_v31, 0.0  ;;  %v166_v35 = vmul.f32 %v129_v31, %v129_v31  ;;  %v475_v36 = vpop.f32.mrb[1].mxu1  ;;  %v81_v37 = vpop.f32.mrb[2].mxu0 }
  0xe1   :  { %v156_v38 = vsel %vm135_vm2, %v155_v28, 0.0  ;;  %v194_v39 = vcombine.high %v193_v29, %v193_v29  ;;  %v201_v40 = vrot.slane %v193_v29, %v192_v25  ;;  %v147_v41 = vrot.slane %v146_v34, 4  ;;  %v132_v42 = vpop.f32.mrb[2].mxu1  ;;  %v468_v43 = vpop.f32.mrb[3].mxu0 }
  0xe2   :  { %v138_v44 = vadd.f32 %v137_v33, %v136_v27  ;;  %v157_v45 = vrot.slane %v156_v38, 4  ;;  %v167_v46 = vsel %vm145_vm3, %v166_v35, 0.0  ;;  %v476_v47 = vpop.f32.mrb[3].mxu1 }
  0xe3   :  { %v208_v48 = vrot.slane %v194_v39, %v192_v25  ;;  %v212_v49 = vrot.slane %v201_v40, %v615_v30  ;;  %v148_v50 = vadd.f32 %v147_v41, %v146_v34  ;;  %v168_v51 = vrot.slane %v167_v46, 4  ;;  %v180_v25 = vld [vmem:[%s674_s5 + $0x1] sm:$0x1] }
  0xe4   :  { %v139_v52 = vrot.slane %v138_v44, 2  ;;  %v158_v53 = vadd.f32 %v157_v45, %v156_v38 }
  0xe5   :  { %v149_v54 = vrot.slane %v148_v50, 2  ;;  %v169_v55 = vadd.f32 %v168_v51, %v167_v46  ;;  %v216_v56 = vrot.slane %v208_v48, %v615_v30  ;;  %v219_v57 = vadd.f32 %v212_v49, %v129_v31 }
  0xe6   :  { %v140_v58 = vadd.f32 %v139_v52, %v138_v44  ;;  %v159_v59 = vrot.slane %v158_v53, 2 }
  0xe7   :  { %v150_v60 = vadd.f32 %v149_v54, %v148_v50  ;;  %v170_v61 = vrot.slane %v169_v55, 2  ;;  %v220_v62 = vadd.f32 %v216_v56, %v129_v31 }
  0xe8   :  { %v141_v63 = vrot.slane %v140_v58, 1  ;;  %v160_v0 = vadd.f32 %v159_v59, %v158_v53 }
  0xe9   :  { %v151_v1 = vrot.slane %v150_v60, 1  ;;  %v171_v2 = vadd.f32 %v170_v61, %v169_v55 }
  0xea   :  { %v142_v3 = vadd.f32 %v141_v63, %v140_v58  ;;  %v161_v4 = vrot.slane %v160_v0, 1 }
  0xeb   :  { %v152_v5 = vadd.f32 %v151_v1, %v150_v60  ;;  %v172_v6 = vrot.slane %v171_v2, 1 }
  0xec   :  { %v144_v7 = vmul.f32 0.5, %v142_v3  ;;  %v162_v8 = vadd.f32 %v161_v4, %v160_v0 }
  0xed   :  { %v154_v9 = vmul.f32 0.125, %v152_v5  ;;  %v173_v10 = vadd.f32 %v172_v6, %v171_v2 }
  0xee   :  { %v163_v11 = vmul.f32 0.5, %v162_v8  ;;  %v164_v12 = vmul.f32 %v144_v7, %v144_v7 }
  0xef   :  { %v174_v13 = vmul.f32 0.125, %v173_v10  ;;  %v175_v14 = vmul.f32 %v154_v9, %v154_v9  ;;  %v177_v15 = vadd.f32 %v154_v9, %v144_v7 }
  0xf0   :  { %v165_v16 = vsub.f32 %v163_v11, %v164_v12 }
  0xf1   :  { %v176_v17 = vsub.f32 %v174_v13, %v175_v14 }
  0xf3   :  { %v178_v18 = vadd.f32 %v176_v17, %v165_v16 }
  0xf5   :  { %v181_v19 = vadd.f32 1e-05, %v178_v18 }
  0xf7   :  { %493 = vrsqrt.f32 %v181_v19 }
 0x101   :  { %v494_v21 = vpop.eup %493 }
 0x102   :  { %v183_v23 = vmul.f32 %v494_v21, %v179_v20 }
 0x104   :  { %v184_v26 = vmul.f32 %v183_v23, %v177_v15  ;;  %v224_v27 = vrot.slane %v183_v23, %v615_v30 }
 0x106   :  { %v185_v28 = vsub.f32 %v180_v25, %v184_v26  ;;  %v225_v29 = vmul.f32 %v224_v27, %v219_v57  ;;  %v226_v31 = vmul.f32 %v224_v27, %v220_v62 }
 0x108   :  { %v230_v32 = vrot.slane %v185_v28, %v615_v30  ;;  %v371_v28 = vld [vmem:[%s674_s5 + $0x2] sm:$0x1] }
 0x10a   :  { %v231_v33 = vadd.f32 %v230_v32, %v225_v29  ;;  %v232_v34 = vadd.f32 %v230_v32, %v226_v31  ;;  %v372_v32 = vld [vmem:[%s674_s5 + $0x3] sm:$0x1] }
 0x10c   :  { %vm233_vm4 = vcmp.ge.f32.partialorder %v231_v33, 0.0  ;;  %vm234_vm5 = vcmp.ge.f32.partialorder %v232_v34, 0.0  ;;  %v235_v35 = vmul.f32 0.01, %v231_v33  ;;  %v236_v36 = vmul.f32 0.01, %v232_v34 }
 0x10e   :  { %v237_v37 = vsel %vm233_vm4, %v231_v33, %v235_v35  ;;  %v238_v38 = vsel %vm234_vm5, %v232_v34, %v236_v36 }
 0x10f   :  { %v242_v39 = vpack.c.bf16 %v237_v37, %v237_v37  ;;  %v243_v40 = vpack.c.bf16 %v238_v38, %v238_v38 }
 0x111   :  { %480 = vmatmul.mubr.msk.bf16.vlgmr.msra.gmra.mrb[4].mxu0 %vm145_vm3, %v242_v39  ;;  %486 = vmatmul.mubr.msk.bf16.vlgmr.msra.gmra.mrb[4].mxu1 %vm145_vm3, %v243_v40 }
 0x1e4   :  { %v281_v41 = vpop.f32.mrb[4].mxu0  ;;  %v324_v42 = vpop.f32.mrb[4].mxu1 }
 0x1e5   :  { %v331_v43 = vsel %vm330_vm6, %v281_v41, 0.0  ;;  %v348_v44 = vmul.f32 %v281_v41, %v281_v41  ;;  %v338_v45 = vsel %vm330_vm6, %v324_v42, 0.0  ;;  %v349_v46 = vmul.f32 %v324_v42, %v324_v42  ;;  %v481_v47 = vpop.f32.mrb[5].mxu0  ;;  %v487_v48 = vpop.f32.mrb[5].mxu1 }
 0x1e6   :  { %v332_v49 = vrot.slane %v331_v43, 4  ;;  %v339_v50 = vrot.slane %v338_v45, 4  ;;  %v284_v51 = vpop.f32.mrb[6].mxu0  ;;  %v327_v52 = vpop.f32.mrb[6].mxu1 }
 0x1e7   :  { %v350_v53 = vsel %vm330_vm6, %v348_v44, 0.0  ;;  %v357_v54 = vsel %vm330_vm6, %v349_v46, 0.0  ;;  %v482_v55 = vpop.f32.mrb[7].mxu0  ;;  %v488_v56 = vpop.f32.mrb[7].mxu1 }
 0x1e8   :  { %v333_v57 = vadd.f32 %v332_v49, %v331_v43  ;;  %v351_v58 = vrot.slane %v350_v53, 4  ;;  %v340_v59 = vadd.f32 %v339_v50, %v338_v45  ;;  %v358_v60 = vrot.slane %v357_v54, 4  ;;  %v450_v43 = vld [vmem:[%s675_s6] ss:$0 sm:$0xff]  ;;  %s524_s6 = smov [#allocation3]  }
 0x1e9   :  { %s438_s13 = sshll.u32 %s524_s6, 4  ;;  %s439_s13 = int_to_ptr.vmem [resolvable:$true] %s438_s13 }
 0x1ea   :  { %v334_v61 = vrot.slane %v333_v57, 2  ;;  %v352_v62 = vadd.f32 %v351_v58, %v350_v53  ;;  %v341_v63 = vrot.slane %v340_v59, 2  ;;  %v359_v0 = vadd.f32 %v358_v60, %v357_v54  ;;  %s497_s14 = scalar_lea.vmem %s439_s13, 32  ;;  %p502_p1 = scmp.lt.s32.totalorder %s439_s13, %s439_s13 }
 0x1eb   :  { %p498_p0 = scmp.ne.s32.totalorder %s439_s13, %s497_s14  ;;  %p503_p2 = scmp.lt.s32.totalorder %s497_s14, %s497_s14 }
 0x1ec   :  { %v335_v1 = vadd.f32 %v334_v61, %v333_v57  ;;  %v353_v2 = vrot.slane %v352_v62, 2  ;;  %v342_v3 = vadd.f32 %v341_v63, %v340_v59  ;;  %v360_v4 = vrot.slane %v359_v0, 2 }
 0x1ed   :  { %p504_p3 = por %p503_p2, %p502_p1 }
 0x1ee   :  { %v336_v5 = vrot.slane %v335_v1, 1  ;;  %v354_v6 = vadd.f32 %v353_v2, %v352_v62  ;;  %v343_v7 = vrot.slane %v342_v3, 1  ;;  %v361_v8 = vadd.f32 %v360_v4, %v359_v0 }
 0x1ef   :  { %p505_p4 = pnand %p504_p3, %p498_p0 }
 0x1f0   :  { %v337_v9 = vadd.f32 %v336_v5, %v335_v1  ;;  %v355_v10 = vrot.slane %v354_v6, 1  ;;  %v344_v11 = vadd.f32 %v343_v7, %v342_v3  ;;  %v362_v12 = vrot.slane %v361_v8, 1 }
 0x1f2   :  { %v345_v13 = vsel %vm330_vm6, %v337_v9, 0.0  ;;  %v356_v14 = vadd.f32 %v355_v10, %v354_v6  ;;  %v346_v15 = vsel %vm330_vm6, %v344_v11, 0.0  ;;  %v363_v16 = vadd.f32 %v362_v12, %v361_v8 }
 0x1f3   :  { %v347_v17 = vadd.f32 %v346_v15, %v345_v13 }
 0x1f4   :  { %v364_v18 = vsel %vm330_vm6, %v356_v14, 0.0  ;;  %v365_v19 = vsel %vm330_vm6, %v363_v16, 0.0 }
 0x1f5   :  { %v366_v20 = vadd.f32 %v365_v19, %v364_v18  ;;  %v367_v21 = vmul.f32 0.0625, %v347_v17 }
 0x1f7   :  { %v368_v23 = vmul.f32 0.0625, %v366_v20  ;;  %v369_v25 = vmul.f32 %v367_v21, %v367_v21 }
 0x1f9   :  { %v370_v26 = vsub.f32 %v368_v23, %v369_v25 }
 0x1fb   :  { %v373_v27 = vadd.f32 1e-05, %v370_v26 }
 0x1fd   :  { %495 = vrsqrt.f32 %v373_v27 }
 0x207   :  { %v496_v29 = vpop.eup %495 }
 0x208   :  { %v375_v31 = vmul.f32 %v496_v29, %v371_v28 }
 0x20a   :  { %v376_v33 = vmul.f32 %v375_v31, %v367_v21  ;;  %v381_v34 = vrot.slane %v375_v31, %v615_v30 }
 0x20c   :  { %v377_v35 = vsub.f32 %v372_v32, %v376_v33  ;;  %v382_v36 = vmul.f32 %v381_v34, %v281_v41  ;;  %v383_v37 = vmul.f32 %v381_v34, %v324_v42  ;;  %v412_v42 = vstv %s676_s7 }
 0x20e   :  { %v387_v38 = vrot.slane %v377_v35, %v615_v30  ;;  %v418_v30 = vand.u32 127, %v190_v22 }
 0x210   :  { %v389_v39 = vadd.f32 %v387_v38, %v383_v37  ;;  %v388_v40 = vadd.f32 %v387_v38, %v382_v36  ;;  %v421_v52 = vsub.s32 %v418_v30, %v611_v24 }
 0x212   :  { %vm390_vm7 = vcmp.ge.f32.partialorder %v388_v40, 0.0  ;;  %v392_v44 = vmul.f32 0.01, %v388_v40  ;;  %vm391_vm8 = vcmp.ge.f32.partialorder %v389_v39, 0.0  ;;  %v393_v45 = vmul.f32 0.01, %v389_v39 }
 0x214   :  { %v394_v46 = vsel %vm390_vm7, %v388_v40, %v392_v44  ;;  %v395_v47 = vsel %vm391_vm8, %v389_v39, %v393_v45 }
 0x215   :  { %v403_v48 = vmul.f32 %v450_v43, %v394_v46  ;;  %v404_v50 = vmul.f32 %v450_v43, %v395_v47 }
 0x217   :  { %v405_v49 = vsel %vm330_vm6, %v403_v48, 0.0  ;;  %v408_v41 = vsel %vm330_vm6, %v404_v50, 0.0 }
 0x218   :  { %406 = vadd.xlane.f32.xlu0 %v405_v49 }
 0x21c   :  { %409 = vadd.xlane.f32.xlu0 %v408_v41 }
 0x2a5   :  { %v407_v51 = vpop.xlane.xlu0 %406 }
 0x2a6   :  { %v413_v53 = vadd.f32 %v412_v42, %v407_v51 }
 0x2a8   :  { %v422_v56 = vrot.slane %v413_v53, %v421_v52 }
 0x2a9   :  { %v410_v54 = vpop.xlane.xlu0 %409 }
 0x2aa   :  { %v414_v55 = vadd.f32 %v412_v42, %v410_v54 }
 0x2ac   :  { %v426_v57 = vrot.slane %v414_v55, %v421_v52 }
 0x2ae   :  { %v428_v58 = vsel %vm427_vm9, %v426_v57, %v422_v56 }
 0x2af   :  { %431 = vst.msk [vmem:[#allocation3] sm:$0x3] %vm430_vm10, %v428_v58 }
 0x2b0   :  { %508 = shalt.err (!%p505_p4)
}
 0x2b1   :  { %s509_s16 = scalar_lea.hbm %s677_s8, 32 }
 0x2b2   :  { %p510_p5 = scmp.ne.s32.totalorder %s677_s8, %s509_s16  ;;  %p513_p6 = scmp.lt.u32.totalorder %s509_s16, %s677_s8 }
 0x2b4   :  { %p515_p7 = pnand %p513_p6, %p510_p5 }
 0x2b6   :  { %518 = shalt.err (!%p515_p7)
}
 0x2b7   :  { %441 = dma.vmem_to_hbm [thread:$0]  %s439_s13, 32, %s677_s8, [#allocation4]  }
 0x2b8   :  { %519 = dma.done.wait [#allocation4], 32  }
 0x2b9   :  { %520 = vsyncadd [#allocation4], 4294967264 }
 0x2ba   :  { %445 = vsyncpa [#allocation4], 1 }

</bundles_post_ra>
